<compile_context>
chip_gen: v5e
topology: v5e:2x2
jax: 0.10.0
libtpu: 0.0.40
codegen_flags: <defaults>
</compile_context>

<pallas_src>
import functools

import jax
import jax.numpy as jnp
from jax.experimental import pallas as pl
from jax.experimental.pallas import tpu as pltpu


def _round_up(x: int, m: int) -> int:
    return (x + m - 1) // m * m


def _linear_kernel(x_ref, wt_ref, b_ref, o_ref):
    # x_ref: (TB, D_in), wt_ref: (D_in, TC), b_ref: (1, TC), o_ref: (TB, TC)
    acc = jnp.dot(x_ref[...], wt_ref[...], preferred_element_type=jnp.float32)
    o_ref[...] = (acc + b_ref[...].astype(jnp.float32)).astype(o_ref.dtype)


def prepare_classifier_params(weight, bias, lane: int = 128):
    """One-time parameter prep (do NOT call per forward).

    weight: (C, D_in) PyTorch nn.Linear layout;  bias: (C,)
    Returns (wt_pad, b_pad, C) with wt_pad: (D_in, C_pad), b_pad: (1, C_pad),
    C_pad = round_up(C, lane), padded columns zero (lane-dense output, full MXU N).
    """
    C, D_in = weight.shape
    C_pad = _round_up(C, lane)
    wt_pad = jnp.zeros((D_in, C_pad), dtype=weight.dtype).at[:, :C].set(weight.T)
    b_pad = jnp.zeros((1, C_pad), dtype=bias.dtype).at[0, :C].set(bias)
    return wt_pad, b_pad, C


def classifier_layer(x, wt_pad, b_pad, num_classes, *,
                     block_b: int = 1024,
                     block_c: int = 2048,
                     vmem_budget_bytes: int = 48 * 1024 * 1024,
                     compute_dtype=None):
    """Forward of ClassifierLayer: x @ W^T + b, returns (B, num_classes).

    x:      (B, D_in)
    wt_pad: (D_in, C_pad)  -- from prepare_classifier_params
    b_pad:  (1, C_pad)
    """
    B, D_in = x.shape
    D_in_w, C_pad = wt_pad.shape
    assert D_in == D_in_w
    assert C_pad % 128 == 0 and num_classes <= C_pad

    out_dtype = x.dtype
    if compute_dtype is not None:
        # Prefer casting at the producer (store backbone activations / weights in
        # bf16) -- this wrapper cast is an extra un-fused HBM pass over x.
        x = x.astype(compute_dtype)
        wt_pad = wt_pad.astype(compute_dtype)

    isx = jnp.dtype(x.dtype).itemsize
    isw = jnp.dtype(wt_pad.dtype).itemsize
    isb = jnp.dtype(b_pad.dtype).itemsize
    iso = jnp.dtype(out_dtype).itemsize

    # Sublane packing for the batch (second-minor) dim of x / out tiles.
    pack = {4: 8, 2: 16, 1: 32}.get(isx, 8)

    # ---- tile selection -----------------------------------------------------
    TC = min(C_pad, _round_up(block_c, 128))
    TB = min(_round_up(block_b, pack), _round_up(B, pack))
    if B > pack:                       # >=2 batch tiles so both v7x TCs get work
        TB = min(TB, _round_up(pl.cdiv(B, 2), pack))
    TB = max(TB, pack)

    headroom = 4 * 1024 * 1024
    fit_budget = max(vmem_budget_bytes - headroom, 8 * 1024 * 1024)

    def working_set(tb, tc):
        n_c = pl.cdiv(C_pad, tc)
        nw = 1 if n_c == 1 else 2      # weight/bias buffer count
        return (nw * (D_in * tc * isw + tc * isb)
                + 2 * tb * D_in * isx          # double-buffered x stream
                + 2 * tb * tc * iso)           # double-buffered out stream

    while working_set(TB, TC) > fit_budget and TB > pack:
        TB = max(pack, _round_up(TB // 2, pack))
    while working_set(TB, TC) > fit_budget and TC > 128:
        TC = max(128, _round_up(TC // 2, 128))
    # TODO(synk): for very large D_in (>= ~4-8k, esp. v7x) add a K grid axis
    # ("arbitrary", last) with an f32 VMEM accumulator instead of full-D_in tiles.

    n_b = pl.cdiv(B, TB)
    n_c = pl.cdiv(C_pad, TC)
    w_bufs = 1 if n_c == 1 else 2      # no double-buffer for a never-changing block

    cost = pl.CostEstimate(
        flops=2 * B * D_in * C_pad,
        transcendentals=0,
        bytes_accessed=(n_c * B * D_in * isx      # x re-streamed once per class tile
                        + D_in * C_pad * isw      # weight read exactly once
                        + C_pad * isb
                        + B * C_pad * iso),
    )

    vmem_limit = int(min(vmem_budget_bytes,
                         max(working_set(TB, TC) + headroom, 16 * 1024 * 1024)))

    out = pl.pallas_call(
        _linear_kernel,
        out_shape=jax.ShapeDtypeStruct((B, C_pad), out_dtype),
        grid_spec=pltpu.PrefetchScalarGridSpec(
            num_scalar_prefetch=0,
            # Class tiles outermost: the (large) weight streams from HBM exactly
            # once; x (usually the smaller stream) is re-read per class tile.
            grid=(n_c, n_b),
            in_specs=[
                pl.BlockSpec((TB, D_in), lambda c, b: (b, 0)),     # streamed x tiles
                pl.BlockSpec((D_in, TC), lambda c, b: (0, c),
                             pipeline_mode=pl.Buffered(w_bufs)),   # (resident) weight
                pl.BlockSpec((1, TC), lambda c, b: (0, c),
                             pipeline_mode=pl.Buffered(w_bufs)),   # (resident) bias
            ],
            out_specs=pl.BlockSpec((TB, TC), lambda c, b: (b, c)),
        ),
        compiler_params=pltpu.CompilerParams(
            dimension_semantics=("parallel", "parallel"),   # megacore on v7x
            vmem_limit_bytes=vmem_limit,
        ),
        cost_estimate=cost,
    )(x, wt_pad, b_pad)

    if num_classes == C_pad:
        return out
    # Batch is never padded; only the (small) class dim is sliced.  Downstream
    # consumers that can mask padded classes should take `out` directly instead.
    return out[:, :num_classes]


if __name__ == "__main__":
    # Synthetic config: BACKBONE_OUT_DIM=32, CLASSES=16, batch=8
    B, D_IN, CLASSES = 8, 32, 16

    key = jax.random.PRNGKey(0)
    kx, kw, kb = jax.random.split(key, 3)

    x = jax.random.normal(kx, (B, D_IN), dtype=jnp.float32)
    # nn.Linear-shaped params: weight (C, D_in), bias (C,)
    bound = 1.0 / (D_IN ** 0.5)
    weight = jax.random.uniform(kw, (CLASSES, D_IN), dtype=jnp.float32,
                                minval=-bound, maxval=bound)
    bias = jax.random.uniform(kb, (CLASSES,), dtype=jnp.float32,
                              minval=-bound, maxval=bound)

    # One-time parameter prep (cached W^T + lane-dense class padding).
    wt_pad, b_pad, n_classes = prepare_classifier_params(weight, bias)

    fwd = jax.jit(functools.partial(classifier_layer, num_classes=n_classes))
    out = fwd(x, wt_pad, b_pad)
    out = jax.block_until_ready(out)

    # Reference check against plain JAX (nn.Linear semantics)
    ref = x @ weight.T + bias
    assert out.shape == (B, CLASSES)
    assert jnp.allclose(out, ref, atol=1e-5, rtol=1e-5)

    print("KERNEL_OK")
</pallas_src>

<mosaic_0001>
module attributes {stable_mosaic.version = 11 : i64} {
  func.func @_linear_kernel(%arg0: i32, %arg1: i32, %arg2: memref<8x32xf32, #tpu.memory_space<vmem>>, %arg3: memref<32x128xf32, #tpu.memory_space<vmem>>, %arg4: memref<1x128xf32, #tpu.memory_space<vmem>>, %arg5: memref<8x128xf32, #tpu.memory_space<vmem>>) attributes {dimension_semantics = [#tpu.dimension_semantics<parallel>, #tpu.dimension_semantics<parallel>], iteration_bounds = array<i64: 1, 1>, scalar_prefetch = 0 : i64, scratch_operands = 0 : i64, tpu.core_type = #tpu.core_type<tc>, window_params = [{transform_indices = @transform_0, window_bounds = array<i64: 8, 32>}, {pipeline_mode = #tpu.pipeline_mode<synchronous>, transform_indices = @transform_1, window_bounds = array<i64: 32, 128>}, {pipeline_mode = #tpu.pipeline_mode<synchronous>, transform_indices = @transform_2, window_bounds = array<i64: 1, 128>}, {transform_indices = @transform_3, window_bounds = array<i64: 8, 128>}]} {
    %c0 = arith.constant 0 : index
    %c0_0 = arith.constant 0 : index
    %0 = vector.load %arg2[%c0, %c0_0] : memref<8x32xf32, #tpu.memory_space<vmem>>, vector<8x32xf32>
    %c0_1 = arith.constant 0 : index
    %c0_2 = arith.constant 0 : index
    %1 = vector.load %arg3[%c0_1, %c0_2] : memref<32x128xf32, #tpu.memory_space<vmem>>, vector<32x128xf32>
    %cst = arith.constant dense<0.000000e+00> : vector<8x128xf32>
    %2 = tpu.matmul %0, %1, %cst {dimension_numbers = #tpu.dot_dimension_numbers<[1], [0], [0], [1], [0, 0, 1, 1], [], []>} : vector<8x32xf32>, vector<32x128xf32>, vector<8x128xf32> -> vector<8x128xf32>
    %c0_3 = arith.constant 0 : index
    %c0_4 = arith.constant 0 : index
    %3 = vector.load %arg4[%c0_3, %c0_4] : memref<1x128xf32, #tpu.memory_space<vmem>>, vector<1x128xf32>
    %4 = vector.broadcast %3 : vector<1x128xf32> to vector<8x128xf32>
    %5 = arith.addf %2, %4 : vector<8x128xf32>
    %c0_5 = arith.constant 0 : index
    %c0_6 = arith.constant 0 : index
    %6 = vector.load %arg5[%c0_5, %c0_6] : memref<8x128xf32, #tpu.memory_space<vmem>>, vector<8x128xf32>
    tpu.vector_store %arg5[%c0_5, %c0_6], %5 {strides = array<i32>} : memref<8x128xf32, #tpu.memory_space<vmem>>, vector<8x128xf32>,
    return
  }
  func.func @transform_0(%arg0: i32, %arg1: i32) -> (i32, i32) {
    %c0_i32 = arith.constant 0 : i32
    %c0_i32_0 = arith.constant 0 : i32
    return %arg1, %c0_i32 : i32, i32
  }
  func.func @transform_1(%arg0: i32, %arg1: i32) -> (i32, i32) {
    %c0_i32 = arith.constant 0 : i32
    %c0_i32_0 = arith.constant 0 : i32
    return %c0_i32, %arg0 : i32, i32
  }
  func.func @transform_2(%arg0: i32, %arg1: i32) -> (i32, i32) {
    %c0_i32 = arith.constant 0 : i32
    %c0_i32_0 = arith.constant 0 : i32
    return %c0_i32, %arg0 : i32, i32
  }
  func.func @transform_3(%arg0: i32, %arg1: i32) -> (i32, i32) {
    %c0_i32 = arith.constant 0 : i32
    return %arg1, %arg0 : i32, i32
  }
}

</mosaic_0001>

<bundles_post_ra>
// kernel: classifier_layer.1
= control target key start
LH: loop header
LB: loop body
LE: loop exit
PB: predicated region body
PF: predicated region fallthrough
CT: control target
= control target key end

     0   :  { %8 = vsyncpa [#allocation3], 0  ;;  %s219_s0 = inlined_call_operand.hbm [shape: f32[8,32], index: 0, kind: input, shape index: {}]   ;;  %s220_s1 = inlined_call_operand.hbm [shape: f32[32,128], index: 1, kind: input, shape index: {}]   ;;  %s221_s2 = inlined_call_operand.vmem [shape: f32[1,128], index: 2, kind: input, shape index: {}]   ;;  %s222_s3 = inlined_call_operand.hbm [shape: f32[8,128], index: 3, kind: output, shape index: {}]  }
   0x1   :  { %9 = vsyncpa [#allocation6], 0 }
   0x2   :  { %10 = vsyncpa [#allocation4], 0  ;;  %s16_s14 = sshll.u32 %s219_s0, 4  ;;  %s182_s15 = smov [#allocation2]   ;;  %s17_s14 = int_to_ptr.hbm [resolvable:$true] %s16_s14 }
   0x3   :  { %s18_s16 = sshll.u32 %s182_s15, 4  ;;  %s26_s19 = sshll.u32 %s220_s1, 4  ;;  %s19_s16 = int_to_ptr.vmem [resolvable:$true] %s18_s16  ;;  %s27_s19 = int_to_ptr.hbm [resolvable:$true] %s26_s19 }
   0x4   :  { %21 = dma.hbm_to_vmem [thread:$0]  %s17_s14, 128, %s19_s16, [#allocation3]  }
   0x5   :  { %s183_s20 = smov [#allocation5]   ;;  %s184_s22 = smov 128  }
   0x6   :  { %s28_s21 = sshll.u32 %s183_s20, 4  ;;  %s185_s23 = smov 8   ;;  %s29_s21 = int_to_ptr.vmem [resolvable:$true] %s28_s21 }
   0x7   :  { %34 = dma.hbm_to_vmem [thread:$0]  %s27_s19, 512, %s29_s21, [#allocation6], %s184_s22, %s184_s22, %s185_s23  }
   0x8   :  { %176 = dma.done.wait [#allocation3], 128  }
   0x9   :  { %177 = vsyncadd [#allocation3], 4294967168 }
   0xa   :  { %178 = dma.done.wait [#allocation6], 512  }
   0xb   :  { %179 = vsyncadd [#allocation6], 4294966784  ;;  %v49_v0 = vld [vmem:[#allocation5 + $0x18] sm:$0xff]  ;;  %v48_v1 = vld [vmem:[#allocation5 + $0x10] sm:$0xff]  ;;  %vm54_vm0 = vcmask 261120   ;;  %s186_s24 = smov [#allocation7]  }
   0xc   :  { %70 = vmatpush.msra.mxu0 %v49_v0  ;;  %v47_v2 = vld [vmem:[#allocation5 + $0x8] sm:$0xff]  ;;  %v46_v3 = vld [vmem:[#allocation5] sm:$0xff]  ;;  %v45_v4 = vld [vmem:[#allocation2] sm:$0xff]  ;;  %s84_s25 = sshll.u32 %s186_s24, 4  ;;  %s86_s28 = sshll.u32 %s222_s3, 4  ;;  %s85_s25 = int_to_ptr.vmem [resolvable:$true] %s84_s25  ;;  %s87_s28 = int_to_ptr.hbm [resolvable:$true] %s86_s28 }
   0xd   :  { %v103_v5 = vld [vmem:[%s221_s2] ss:$0 sm:$0xff] }
   0xe   :  { %71 = vmatpush.msra.mxu0 %v48_v1 }
  0x10   :  { %72 = vmatpush.msra.mxu0 %v47_v2 }
  0x12   :  { %73 = vmatpush.msra.mxu0 %v46_v3 }
  0x13   :  { %97 = vmatmul.msk.f32.vlgmr.msra.gmra.mxu0 %vm54_vm0, %v45_v4 }
  0x90   :  { %v75_v6 = vpop.f32.mrf.mxu0 }
  0x91   :  { %v76_v7 = vadd.f32 %v103_v5, %v75_v6 }
  0x93   :  { %78 = vst [vmem:[#allocation7] sm:$0xff] %v76_v7 }
  0x94   :  { %89 = dma.vmem_to_hbm [thread:$0]  %s85_s25, 128, %s87_s28, [#allocation4]  }
  0x95   :  { %180 = dma.done.wait [#allocation4], 128  }
  0x96   :  { %181 = vsyncadd [#allocation4], 4294967168 }
  0x97   :  { %94 = vsyncpa [#allocation3], 1 }
  0x98   :  { %95 = vsyncpa [#allocation6], 1 }
  0x99   :  { %96 = vsyncpa [#allocation4], 1 }

</bundles_post_ra>
